<compile_context>
chip_gen: v6e
topology: v6e:2x2x1
jax: 0.10.0
libtpu: 0.0.40
codegen_flags: <defaults>
</compile_context>

<pallas_src>
import math

import jax
import jax.numpy as jnp
from jax.experimental import pallas as pl
from jax.experimental.pallas import tpu as pltpu

# Small, module-consistent shapes.
BATCH = 2
SEQ = 8
D_MODEL = 32
H = 4
D_K = D_MODEL // H
D_FF = 64
EPS = 1e-6
N_TOK = BATCH * SEQ


def _layernorm(v, alpha, bias):
    # Matches the custom torch LayerNormalization: unbiased std (ddof=1),
    # eps added to std (NOT to variance, so it cannot collapse into rsqrt).
    # Exact sqrt + divide here: LN feeds every subsequent matmul, so approx
    # reciprocal error would compound (perf-review correctness concern).
    n = v.shape[-1]
    mean = jnp.mean(v, axis=-1, keepdims=True)
    var = jnp.sum((v - mean) ** 2, axis=-1, keepdims=True) * (1.0 / (n - 1))
    std = jnp.sqrt(var)
    return alpha * (v - mean) / (std + EPS) + bias


def encoder_block_kernel(x_ref, mb_ref, wattn_ref, w12_ref, pp_ref, o_ref):
    x = x_ref[...]                       # (N, D) = (B*S, D)

    pp = pp_ref[...]                     # (6, D_FF) packed small params
    a1 = pp[0:1, :D_MODEL]
    g1 = pp[1:2, :D_MODEL]
    a2 = pp[2:3, :D_MODEL]
    g2 = pp[3:4, :D_MODEL]
    b2 = pp[4:5, :D_MODEL]
    b1 = pp[5:6, :]                      # (1, D_FF)

    w_attn = wattn_ref[...]              # (4H, D, D_K): [wq_h | wk_h | wv_h | woT_h]
    wqkv_h = w_attn[0:3 * H]             # leading-axis static slices: free
    woT_h = w_attn[3 * H:]

    # ---- residual connection 0: pre-norm multi-head self-attention ----
    xn = _layernorm(x, a1, g1)

    # Q/K/V: head structure lives entirely in the wrapper-reshaped weight
    # stack -> one batched matmul, no lane slices / stack / concat in-kernel.
    xh = jnp.broadcast_to(xn[None, :, :], (3 * H, N_TOK, D_MODEL))
    qkv = jnp.einsum('hnd,hdk->hnk', xh, wqkv_h,
                     preferred_element_type=jnp.float32)     # (3H, N, D_K)
    qh = qkv[0:H]
    kh = qkv[H:2 * H]
    vh = qkv[2 * H:]

    # Scores over the flattened token axis; cross-batch pairs (and masked
    # same-batch pairs) carry a -1e9 additive bias, broadcast across heads.
    scale = 1.0 / math.sqrt(D_K)
    s = jnp.einsum('hqd,hkd->hqk', qh, kh,
                   preferred_element_type=jnp.float32)       # (H, N, N)
    s = s * scale + mb_ref[...][None, :, :]
    # Max-subtraction intentionally dropped (bounded scores; exp(-1e9) -> 0).
    p = jnp.exp(s)
    p = p * pl.reciprocal(jnp.sum(p, axis=-1, keepdims=True), approx=True)
    # TODO(synk): attention-prob / residual dropout are identity (eval, p=0).
    ctx = jnp.einsum('hqk,hkd->hqd', p, vh,
                     preferred_element_type=jnp.float32)     # (H, N, D_K)

    # Head merge folded into the output projection: batched matmul against
    # per-head wo^T, then a cheap sum over the leading head axis.
    attn = jnp.sum(
        jnp.einsum('hnk,hek->hne', ctx, woT_h,
                   preferred_element_type=jnp.float32), axis=0)  # (N, D)
    x1 = x + attn

    # ---- residual connection 1: pre-norm feed-forward ----
    xn2 = _layernorm(x1, a2, g2)
    w12 = w12_ref[...]                   # (2D, D_FF) = [w1 ; w2^T], row slices aligned
    w1 = w12[0:D_MODEL, :]
    w2t = w12[D_MODEL:, :]
    h1 = jnp.maximum(
        jnp.dot(xn2, w1, preferred_element_type=jnp.float32) + b1, 0.0)
    ff = jnp.einsum('nf,ef->ne', h1, w2t,
                    preferred_element_type=jnp.float32) + b2
    # NOTE: output lane width D=32 (<128) => masked stores; negligible at
    # these shapes, present a lane-dense slab if D/S are ever scaled.
    o_ref[...] = x1 + ff


def encoder_block(x, mask, params):
    wq, wk, wv, wo, w1, b1, w2, b2, a1, g1, a2, g2 = params
    B, S, D = x.shape
    n = B * S

    # --- wrapper-side layout plumbing (no compute hoisting) ---
    def per_head_cols(w):                # (D, D) -> (H, D, D_K)
        return w.reshape(D, H, D_K).transpose(1, 0, 2)

    woT_h = wo.reshape(H, D_K, D).transpose(0, 2, 1)               # (H, D, D_K)
    w_attn = jnp.concatenate(
        [per_head_cols(wq), per_head_cols(wk), per_head_cols(wv), woT_h],
        axis=0)                                                    # (4H, D, D_K)

    w12 = jnp.concatenate([w1, w2.T], axis=0)                      # (2D, D_FF)

    def pad_row(v):                      # (1, D) -> (1, D_FF)
        return jnp.pad(v, ((0, 0), (0, D_FF - v.shape[1])))
    packed = jnp.concatenate(
        [pad_row(a1), pad_row(g1), pad_row(a2), pad_row(g2), pad_row(b2), b1],
        axis=0)                                                    # (6, D_FF)

    # Additive mask bias over the flattened token axis: block-diagonal with
    # the per-batch mask inside, -1e9 for cross-batch pairs.  (n, n) instead
    # of a per-head (B*H, S, S) slab.
    bias = jnp.where(mask == 0, -1e9, 0.0).astype(jnp.float32)     # (B, S, S)
    bq = jnp.arange(n) // S
    sq = jnp.arange(n) % S
    inner = bias[bq[:, None], sq[:, None], sq[None, :]]            # (n, n)
    mask_bias = jnp.where(bq[:, None] == bq[None, :], inner,
                          jnp.float32(-1e9))

    x2d = x.reshape(n, D)

    out2d = pl.pallas_call(
        encoder_block_kernel,
        out_shape=jax.ShapeDtypeStruct((n, D), jnp.float32),
        compiler_params=pltpu.CompilerParams(
            vmem_limit_bytes=16 * 1024 * 1024),
    )(x2d, mask_bias, w_attn, w12, packed)
    return out2d.reshape(B, S, D)


def reference(x, mask, params):
    """Pure-JAX reference mirroring the PyTorch forward (dropout = identity)."""
    wq, wk, wv, wo, w1, b1, w2, b2, a1, g1, a2, g2 = params

    def ln(v, alpha, bias):
        mean = v.mean(-1, keepdims=True)
        std = jnp.sqrt(((v - mean) ** 2).sum(-1, keepdims=True) / (v.shape[-1] - 1))
        return alpha[0] * (v - mean) / (std + EPS) + bias[0]

    B, S, D = x.shape
    xn = ln(x, a1, g1)
    q, k, v = xn @ wq, xn @ wk, xn @ wv
    qh = q.reshape(B, S, H, D_K).transpose(0, 2, 1, 3)
    kh = k.reshape(B, S, H, D_K).transpose(0, 2, 1, 3)
    vh = v.reshape(B, S, H, D_K).transpose(0, 2, 1, 3)
    s = qh @ kh.transpose(0, 1, 3, 2) / math.sqrt(D_K)
    s = jnp.where(mask[:, None, :, :] == 0, -1e9, s)
    p = jax.nn.softmax(s, axis=-1)
    o = (p @ vh).transpose(0, 2, 1, 3).reshape(B, S, D)
    x1 = x + o @ wo
    xn2 = ln(x1, a2, g2)
    ff = jnp.maximum(xn2 @ w1 + b1[0], 0.0) @ w2 + b2[0]
    return x1 + ff


def make_params(key):
    ks = jax.random.split(key, 8)
    scale = 0.1
    wq = scale * jax.random.normal(ks[0], (D_MODEL, D_MODEL), jnp.float32)
    wk = scale * jax.random.normal(ks[1], (D_MODEL, D_MODEL), jnp.float32)
    wv = scale * jax.random.normal(ks[2], (D_MODEL, D_MODEL), jnp.float32)
    wo = scale * jax.random.normal(ks[3], (D_MODEL, D_MODEL), jnp.float32)
    w1 = scale * jax.random.normal(ks[4], (D_MODEL, D_FF), jnp.float32)
    b1 = scale * jax.random.normal(ks[5], (1, D_FF), jnp.float32)
    w2 = scale * jax.random.normal(ks[6], (D_FF, D_MODEL), jnp.float32)
    b2 = scale * jax.random.normal(ks[7], (1, D_MODEL), jnp.float32)
    a1 = jnp.ones((1, D_MODEL), jnp.float32)   # LayerNorm alpha (init = ones)
    g1 = jnp.zeros((1, D_MODEL), jnp.float32)  # LayerNorm bias  (init = zeros)
    a2 = jnp.ones((1, D_MODEL), jnp.float32)
    g2 = jnp.zeros((1, D_MODEL), jnp.float32)
    return (wq, wk, wv, wo, w1, b1, w2, b2, a1, g1, a2, g2)


if __name__ == "__main__":
    key = jax.random.PRNGKey(0)
    kx, kp = jax.random.split(key)
    x = jax.random.normal(kx, (BATCH, SEQ, D_MODEL), jnp.float32)
    # Causal-style src mask with some zeros, shape (B, S, S).
    mask = (jnp.arange(SEQ)[None, :] <= jnp.arange(SEQ)[:, None]).astype(jnp.int32)
    mask = jnp.broadcast_to(mask[None], (BATCH, SEQ, SEQ))
    params = make_params(kp)

    out = encoder_block(x, mask, params)
    out = jax.block_until_ready(out)

    ref = reference(x, mask, params)
    assert out.shape == (BATCH, SEQ, D_MODEL)
    # Tolerance allows for the approximate EUP reciprocal in the softmax
    # denominator (LayerNorm is now exact).
    assert jnp.allclose(out, ref, rtol=2e-3, atol=2e-3), "mismatch vs reference"
    print("KERNEL_OK")
</pallas_src>

<mosaic_0001>
module attributes {stable_mosaic.version = 11 : i64} {
  func.func @encoder_block_kernel(%arg0: memref<16x32xf32, #tpu.memory_space<vmem>>, %arg1: memref<16x16xf32, #tpu.memory_space<vmem>>, %arg2: memref<16x32x8xf32, #tpu.memory_space<vmem>>, %arg3: memref<64x64xf32, #tpu.memory_space<vmem>>, %arg4: memref<6x64xf32, #tpu.memory_space<vmem>>, %arg5: memref<16x32xf32, #tpu.memory_space<vmem>>) attributes {dimension_semantics = [], scalar_prefetch = 0 : i64, scratch_operands = 0 : i64, tpu.core_type = #tpu.core_type<tc>} {
    %c0 = arith.constant 0 : index
    %c0_0 = arith.constant 0 : index
    %0 = vector.load %arg0[%c0, %c0_0] : memref<16x32xf32, #tpu.memory_space<vmem>>, vector<16x32xf32>
    %c0_1 = arith.constant 0 : index
    %c0_2 = arith.constant 0 : index
    %1 = vector.load %arg4[%c0_1, %c0_2] : memref<6x64xf32, #tpu.memory_space<vmem>>, vector<6x64xf32>
    %2 = vector.extract_strided_slice %1 {offsets = [0, 0], sizes = [1, 32], strides = [1, 1]} : vector<6x64xf32> to vector<1x32xf32>
    %3 = vector.extract_strided_slice %1 {offsets = [1, 0], sizes = [1, 32], strides = [1, 1]} : vector<6x64xf32> to vector<1x32xf32>
    %4 = vector.extract_strided_slice %1 {offsets = [2, 0], sizes = [1, 32], strides = [1, 1]} : vector<6x64xf32> to vector<1x32xf32>
    %5 = vector.extract_strided_slice %1 {offsets = [3, 0], sizes = [1, 32], strides = [1, 1]} : vector<6x64xf32> to vector<1x32xf32>
    %6 = vector.extract_strided_slice %1 {offsets = [4, 0], sizes = [1, 32], strides = [1, 1]} : vector<6x64xf32> to vector<1x32xf32>
    %7 = vector.extract_strided_slice %1 {offsets = [5, 0], sizes = [1, 64], strides = [1, 1]} : vector<6x64xf32> to vector<1x64xf32>
    %c0_3 = arith.constant 0 : index
    %c0_4 = arith.constant 0 : index
    %c0_5 = arith.constant 0 : index
    %8 = vector.load %arg2[%c0_3, %c0_4, %c0_5] : memref<16x32x8xf32, #tpu.memory_space<vmem>>, vector<16x32x8xf32>
    %9 = vector.extract_strided_slice %8 {offsets = [0, 0, 0], sizes = [12, 32, 8], strides = [1, 1, 1]} : vector<16x32x8xf32> to vector<12x32x8xf32>
    %10 = vector.extract_strided_slice %8 {offsets = [12, 0, 0], sizes = [4, 32, 8], strides = [1, 1, 1]} : vector<16x32x8xf32> to vector<4x32x8xf32>
    %cst = arith.constant dense<0.000000e+00> : vector<16xf32>
    %11 = vector.multi_reduction <add>, %0, %cst [1] : vector<16x32xf32> to vector<16xf32>
    %12 = vector.shape_cast %11 : vector<16xf32> to vector<16x1xf32>
    %cst_6 = arith.constant 3.200000e+01 : f32
    %13 = vector.broadcast %cst_6 : f32 to vector<16x1xf32>
    %14 = arith.divf %12, %13 : vector<16x1xf32>
    %15 = vector.broadcast %14 : vector<16x1xf32> to vector<16x32xf32>
    %16 = arith.subf %0, %15 : vector<16x32xf32>
    %17 = arith.mulf %16, %16 : vector<16x32xf32>
    %cst_7 = arith.constant dense<0.000000e+00> : vector<16xf32>
    %18 = vector.multi_reduction <add>, %17, %cst_7 [1] : vector<16x32xf32> to vector<16xf32>
    %19 = vector.shape_cast %18 : vector<16xf32> to vector<16x1xf32>
    %cst_8 = arith.constant 0.0322580636 : f32
    %20 = vector.broadcast %cst_8 : f32 to vector<16x1xf32>
    %21 = arith.mulf %19, %20 : vector<16x1xf32>
    %22 = math.sqrt %21 : vector<16x1xf32>
    %23 = vector.broadcast %14 : vector<16x1xf32> to vector<16x32xf32>
    %24 = arith.subf %0, %23 : vector<16x32xf32>
    %25 = vector.broadcast %2 : vector<1x32xf32> to vector<16x32xf32>
    %26 = arith.mulf %25, %24 : vector<16x32xf32>
    %cst_9 = arith.constant 9.99999997E-7 : f32
    %27 = vector.broadcast %cst_9 : f32 to vector<16x1xf32>
    %28 = arith.addf %22, %27 : vector<16x1xf32>
    %29 = vector.broadcast %28 : vector<16x1xf32> to vector<16x32xf32>
    %30 = arith.divf %26, %29 : vector<16x32xf32>
    %31 = vector.broadcast %3 : vector<1x32xf32> to vector<16x32xf32>
    %32 = arith.addf %30, %31 : vector<16x32xf32>
    %33 = vector.shape_cast %32 : vector<16x32xf32> to vector<1x16x32xf32>
    %34 = vector.shape_cast %33 : vector<1x16x32xf32> to vector<1x16x32xf32>
    %35 = vector.broadcast %34 : vector<1x16x32xf32> to vector<12x16x32xf32>
    "tpu.trace_start"() <{level = 10 : i32, message = "hnd,hdk->hnk"}> : () -> ()
    %cst_10 = arith.constant dense<0.000000e+00> : vector<12x16x8xf32>
    %36 = tpu.matmul %35, %9, %cst_10 {dimension_numbers = #tpu.dot_dimension_numbers<[2], [1], [1], [2], [0, 0, 0, 1, 1, 2], [0], [0]>} : vector<12x16x32xf32>, vector<12x32x8xf32>, vector<12x16x8xf32> -> vector<12x16x8xf32>
    "tpu.trace_stop"() : () -> ()
    %37 = vector.extract_strided_slice %36 {offsets = [0, 0, 0], sizes = [4, 16, 8], strides = [1, 1, 1]} : vector<12x16x8xf32> to vector<4x16x8xf32>
    %38 = vector.extract_strided_slice %36 {offsets = [4, 0, 0], sizes = [4, 16, 8], strides = [1, 1, 1]} : vector<12x16x8xf32> to vector<4x16x8xf32>
    %39 = vector.extract_strided_slice %36 {offsets = [8, 0, 0], sizes = [4, 16, 8], strides = [1, 1, 1]} : vector<12x16x8xf32> to vector<4x16x8xf32>
    "tpu.trace_start"() <{level = 10 : i32, message = "hqd,hkd->hqk"}> : () -> ()
    %cst_11 = arith.constant dense<0.000000e+00> : vector<4x16x16xf32>
    %40 = tpu.matmul %37, %38, %cst_11 {dimension_numbers = #tpu.dot_dimension_numbers<[2], [2], [1], [1], [0, 0, 0, 1, 1, 1], [0], [0]>} : vector<4x16x8xf32>, vector<4x16x8xf32>, vector<4x16x16xf32> -> vector<4x16x16xf32>
    "tpu.trace_stop"() : () -> ()
    %cst_12 = arith.constant 0.353553385 : f32
    %41 = vector.broadcast %cst_12 : f32 to vector<4x16x16xf32>
    %42 = arith.mulf %40, %41 : vector<4x16x16xf32>
    %c0_13 = arith.constant 0 : index
    %c0_14 = arith.constant 0 : index
    %43 = vector.load %arg1[%c0_13, %c0_14] : memref<16x16xf32, #tpu.memory_space<vmem>>, vector<16x16xf32>
    %44 = vector.shape_cast %43 : vector<16x16xf32> to vector<1x16x16xf32>
    %45 = vector.broadcast %44 : vector<1x16x16xf32> to vector<4x16x16xf32>
    %46 = arith.addf %42, %45 : vector<4x16x16xf32>
    %47 = math.exp %46 : vector<4x16x16xf32>
    %cst_15 = arith.constant dense<0.000000e+00> : vector<4x16xf32>
    %48 = vector.multi_reduction <add>, %47, %cst_15 [2] : vector<4x16x16xf32> to vector<4x16xf32>
    %49 = vector.shape_cast %48 : vector<4x16xf32> to vector<4x16x1xf32>
    %50 = tpu.reciprocal %49 {approx = true} : vector<4x16x1xf32> -> vector<4x16x1xf32>
    %51 = vector.broadcast %50 : vector<4x16x1xf32> to vector<4x16x16xf32>
    %52 = arith.mulf %47, %51 : vector<4x16x16xf32>
    "tpu.trace_start"() <{level = 10 : i32, message = "hqk,hkd->hqd"}> : () -> ()
    %cst_16 = arith.constant dense<0.000000e+00> : vector<4x16x8xf32>
    %53 = tpu.matmul %52, %39, %cst_16 {dimension_numbers = #tpu.dot_dimension_numbers<[2], [1], [1], [2], [0, 0, 0, 1, 1, 2], [0], [0]>} : vector<4x16x16xf32>, vector<4x16x8xf32>, vector<4x16x8xf32> -> vector<4x16x8xf32>
    "tpu.trace_stop"() : () -> ()
    "tpu.trace_start"() <{level = 10 : i32, message = "hnk,hek->hne"}> : () -> ()
    %cst_17 = arith.constant dense<0.000000e+00> : vector<4x16x32xf32>
    %54 = tpu.matmul %53, %10, %cst_17 {dimension_numbers = #tpu.dot_dimension_numbers<[2], [2], [1], [1], [0, 0, 0, 1, 1, 1], [0], [0]>} : vector<4x16x8xf32>, vector<4x32x8xf32>, vector<4x16x32xf32> -> vector<4x16x32xf32>
    "tpu.trace_stop"() : () -> ()
    %cst_18 = arith.constant dense<0.000000e+00> : vector<16x32xf32>
    %55 = vector.multi_reduction <add>, %54, %cst_18 [0] : vector<4x16x32xf32> to vector<16x32xf32>
    %56 = arith.addf %0, %55 : vector<16x32xf32>
    %cst_19 = arith.constant dense<0.000000e+00> : vector<16xf32>
    %57 = vector.multi_reduction <add>, %56, %cst_19 [1] : vector<16x32xf32> to vector<16xf32>
    %58 = vector.shape_cast %57 : vector<16xf32> to vector<16x1xf32>
    %cst_20 = arith.constant 3.200000e+01 : f32
    %59 = vector.broadcast %cst_20 : f32 to vector<16x1xf32>
    %60 = arith.divf %58, %59 : vector<16x1xf32>
    %61 = vector.broadcast %60 : vector<16x1xf32> to vector<16x32xf32>
    %62 = arith.subf %56, %61 : vector<16x32xf32>
    %63 = arith.mulf %62, %62 : vector<16x32xf32>
    %cst_21 = arith.constant dense<0.000000e+00> : vector<16xf32>
    %64 = vector.multi_reduction <add>, %63, %cst_21 [1] : vector<16x32xf32> to vector<16xf32>
    %65 = vector.shape_cast %64 : vector<16xf32> to vector<16x1xf32>
    %cst_22 = arith.constant 0.0322580636 : f32
    %66 = vector.broadcast %cst_22 : f32 to vector<16x1xf32>
    %67 = arith.mulf %65, %66 : vector<16x1xf32>
    %68 = math.sqrt %67 : vector<16x1xf32>
    %69 = vector.broadcast %60 : vector<16x1xf32> to vector<16x32xf32>
    %70 = arith.subf %56, %69 : vector<16x32xf32>
    %71 = vector.broadcast %4 : vector<1x32xf32> to vector<16x32xf32>
    %72 = arith.mulf %71, %70 : vector<16x32xf32>
    %cst_23 = arith.constant 9.99999997E-7 : f32
    %73 = vector.broadcast %cst_23 : f32 to vector<16x1xf32>
    %74 = arith.addf %68, %73 : vector<16x1xf32>
    %75 = vector.broadcast %74 : vector<16x1xf32> to vector<16x32xf32>
    %76 = arith.divf %72, %75 : vector<16x32xf32>
    %77 = vector.broadcast %5 : vector<1x32xf32> to vector<16x32xf32>
    %78 = arith.addf %76, %77 : vector<16x32xf32>
    %c0_24 = arith.constant 0 : index
    %c0_25 = arith.constant 0 : index
    %79 = vector.load %arg3[%c0_24, %c0_25] : memref<64x64xf32, #tpu.memory_space<vmem>>, vector<64x64xf32>
    %80 = vector.extract_strided_slice %79 {offsets = [0, 0], sizes = [32, 64], strides = [1, 1]} : vector<64x64xf32> to vector<32x64xf32>
    %81 = vector.extract_strided_slice %79 {offsets = [32, 0], sizes = [32, 64], strides = [1, 1]} : vector<64x64xf32> to vector<32x64xf32>
    %cst_26 = arith.constant dense<0.000000e+00> : vector<16x64xf32>
    %82 = tpu.matmul %78, %80, %cst_26 {dimension_numbers = #tpu.dot_dimension_numbers<[1], [0], [0], [1], [0, 0, 1, 1], [], []>} : vector<16x32xf32>, vector<32x64xf32>, vector<16x64xf32> -> vector<16x64xf32>
    %83 = vector.broadcast %7 : vector<1x64xf32> to vector<16x64xf32>
    %84 = arith.addf %82, %83 : vector<16x64xf32>
    %cst_27 = arith.constant 0.000000e+00 : f32
    %85 = vector.broadcast %cst_27 : f32 to vector<16x64xf32>
    %86 = arith.maximumf %84, %85 : vector<16x64xf32>
    "tpu.trace_start"() <{level = 10 : i32, message = "nf,ef->ne"}> : () -> ()
    %cst_28 = arith.constant dense<0.000000e+00> : vector<16x32xf32>
    %87 = tpu.matmul %86, %81, %cst_28 {dimension_numbers = #tpu.dot_dimension_numbers<[1], [1], [0], [0], [0, 0, 1, 0], [], []>} : vector<16x64xf32>, vector<32x64xf32>, vector<16x32xf32> -> vector<16x32xf32>
    "tpu.trace_stop"() : () -> ()
    %88 = vector.broadcast %6 : vector<1x32xf32> to vector<16x32xf32>
    %89 = arith.addf %87, %88 : vector<16x32xf32>
    %90 = arith.addf %56, %89 : vector<16x32xf32>
    %c0_29 = arith.constant 0 : index
    %c0_30 = arith.constant 0 : index
    %91 = vector.load %arg5[%c0_29, %c0_30] : memref<16x32xf32, #tpu.memory_space<vmem>>, vector<16x32xf32>
    tpu.vector_store %arg5[%c0_29, %c0_30], %90 {strides = array<i32>} : memref<16x32xf32, #tpu.memory_space<vmem>>, vector<16x32xf32>,
    return
  }
}

</mosaic_0001>

<bundles_post_ra>
// kernel: tpu_custom_call.1
= control target key start
LH: loop header
LB: loop body
LE: loop exit
PB: predicated region body
PF: predicated region fallthrough
CT: control target
= control target key end

     0   :  { %vm88_vm0 = vcmask 261120   ;;  %s3487_s0 = inlined_call_operand.vmem [shape: f32[16,32], index: 0, kind: input, shape index: {}]   ;;  %s3488_s1 = inlined_call_operand.vmem [shape: f32[16,16], index: 1, kind: input, shape index: {}]   ;;  %s3489_s2 = inlined_call_operand.vmem [shape: f32[16,32,8], index: 2, kind: input, shape index: {}]   ;;  %s3490_s3 = inlined_call_operand.vmem [shape: f32[64,64], index: 3, kind: input, shape index: {}]   ;;  %s3491_s4 = inlined_call_operand.vmem [shape: f32[6,64], index: 4, kind: input, shape index: {}]   ;;  %s3492_s5 = inlined_call_operand.hbm [shape: f32[16,32], index: 5, kind: output, shape index: {}]  }
   0x1   :  { %v3032_v0 = vld [vmem:[%s3487_s0] sm:$0xff]  ;;  %v3037_v1 = vld [vmem:[%s3487_s0 + $0x8] sm:$0xff] }
   0x2   :  { %v89_v2 = vsel %vm88_vm0, %v3032_v0, 0.0 }
   0x3   :  { %10 = vsyncpa [#allocation3], 0  ;;  %90 = vadd.xlane.f32.xlu0 %v89_v2  ;;  %v92_v3 = vsel %vm88_vm0, %v3037_v1, 0.0  ;;  %v27_v14 = vld [vmem:[%s3489_s2 + $0x18] sm:$0xff]  ;;  %v26_v16 = vld [vmem:[%s3489_s2 + $0x10] sm:$0xff]  ;;  %v124_v31 = vlaneseq  ;;  %vm1048_vm5 = vcmask 64512  }
   0x4   :  { %v31_v15 = vld [vmem:[%s3489_s2 + $0x38] sm:$0xff]  ;;  %2669 = vmatprep.subr.mxu0 %v27_v14  ;;  %v30_v17 = vld [vmem:[%s3489_s2 + $0x30] sm:$0xff]  ;;  %v25_v18 = vld [vmem:[%s3489_s2 + $0x8] sm:$0xff]  ;;  %vm1431_vm6 = vcmask 130048   ;;  %vm2335_vm7 = vcmask 523264  }
   0x5   :  { %2680 = vmatprep.subr.mxu1 %v31_v15  ;;  %2670 = vmatpush3.msra.mxu0 %v27_v14  ;;  %v29_v19 = vld [vmem:[%s3489_s2 + $0x28] sm:$0xff]  ;;  %v24_v20 = vld [vmem:[%s3489_s2] sm:$0xff]  ;;  %v35_v22 = vld [vmem:[%s3489_s2 + $0x58] sm:$0xff]  ;;  %v3085_v38 = vshrl.u32 %v124_v31, 7 }
   0x6   :  { %2681 = vmatpush3.msra.mxu1 %v31_v15  ;;  %2671 = vmatprep.subr.mxu0 %v26_v16  ;;  %v28_v21 = vld [vmem:[%s3489_s2 + $0x20] sm:$0xff]  ;;  %v39_v23 = vld [vmem:[%s3489_s2 + $0x78] sm:$0xff]  ;;  %v34_v55 = vld [vmem:[%s3489_s2 + $0x50] sm:$0xff] }
   0x7   :  { %93 = vadd.xlane.f32.xlu0 %v92_v3  ;;  %2682 = vmatprep.subr.mxu1 %v30_v17  ;;  %v126_v42 = vsub.s32 0, %v3085_v38  ;;  %v3091_v43 = vld [vmem:[%s3491_s4] sm:$0x3f]  ;;  %v138_v45 = vsub.s32 1, %v3085_v38  ;;  %v38_v56 = vld [vmem:[%s3489_s2 + $0x70] sm:$0xff]  ;;  %v33_v57 = vld [vmem:[%s3489_s2 + $0x48] sm:$0xff] }
   0x8   :  { %2672 = vmatpush3.msra.mxu0 %v26_v16  ;;  %2683 = vmatpush3.msra.mxu1 %v30_v17  ;;  %v37_v58 = vld [vmem:[%s3489_s2 + $0x68] sm:$0xff]  ;;  %v32_v59 = vld [vmem:[%s3489_s2 + $0x40] sm:$0xff]  ;;  %v43_v61 = vld [vmem:[%s3489_s2 + $0x98] sm:$0xff] }
   0x9   :  { %2673 = vmatprep.subr.mxu0 %v25_v18  ;;  %2684 = vmatprep.subr.mxu1 %v29_v19  ;;  %v127_v44 = vrot.slane %v3091_v43, %v126_v42  ;;  %v139_v46 = vrot.slane %v3091_v43, %v138_v45  ;;  %v36_v60 = vld [vmem:[%s3489_s2 + $0x60] sm:$0xff]  ;;  %v47_v62 = vld [vmem:[%s3489_s2 + $0xb8] sm:$0xff]  ;;  %v42_v63 = vld [vmem:[%s3489_s2 + $0x90] sm:$0xff] }
   0xa   :  { %2674 = vmatpush3.msra.mxu0 %v25_v18  ;;  %2685 = vmatpush3.msra.mxu1 %v29_v19  ;;  %v46_v2 = vld [vmem:[%s3489_s2 + $0xb0] sm:$0xff]  ;;  %v41_v3 = vld [vmem:[%s3489_s2 + $0x88] sm:$0xff]  ;;  %v52_v14 = vld [vmem:[%s3489_s2 + $0xe0] sm:$0xff] }
   0xb   :  { %2675 = vmatprep.subr.mxu0 %v24_v20  ;;  %2686 = vmatprep.subr.mxu1 %v28_v21  ;;  %v59_v15 = vld [vmem:[%s3489_s2 + $0x118] sm:$0xff]  ;;  %v58_v17 = vld [vmem:[%s3489_s2 + $0x110] sm:$0xff]  ;;  %v57_v19 = vld [vmem:[%s3489_s2 + $0x108] sm:$0xff] }
   0xc   :  { %2676 = vmatpush3.msra.mxu0 %v24_v20  ;;  %2687 = vmatpush3.msra.mxu1 %v28_v21  ;;  %v63_v16 = vld [vmem:[%s3489_s2 + $0x138] sm:$0xff]  ;;  %v62_v18 = vld [vmem:[%s3489_s2 + $0x130] sm:$0xff]  ;;  %v61_v20 = vld [vmem:[%s3489_s2 + $0x128] sm:$0xff] }
   0xd   :  { %2691 = vmatprep.subr.mxu0 %v35_v22  ;;  %2702 = vmatprep.subr.mxu1 %v39_v23  ;;  %v56_v21 = vld [vmem:[%s3489_s2 + $0x100] sm:$0xff] }
  0x8c   :  { %v91_v4 = vpop.xlane.xlu0 %90 }
  0x8d   :  { %v96_v5 = vmul.f32 0.03125, %v91_v4  ;;  %v45_v4 = vld [vmem:[%s3489_s2 + $0xa8] sm:$0xff] }
  0x8f   :  { %v3044_v6 = vsub.f32 %v3032_v0, %v96_v5  ;;  %v40_v5 = vld [vmem:[%s3489_s2 + $0x80] sm:$0xff] }
  0x90   :  { %v94_v7 = vpop.xlane.xlu0 %93 }
  0x91   :  { %v97_v8 = vmul.f32 0.03125, %v94_v7  ;;  %v100_v9 = vmul.f32 %v3044_v6, %v3044_v6  ;;  %v128_v47 = vmul.f32 %v127_v44, %v3044_v6  ;;  %v44_v6 = vld [vmem:[%s3489_s2 + $0xa0] sm:$0xff]  ;;  %v51_v7 = vld [vmem:[%s3489_s2 + $0xd8] sm:$0xff] }
  0x93   :  { %v3049_v10 = vsub.f32 %v3037_v1, %v97_v8  ;;  %v102_v11 = vsel %vm88_vm0, %v100_v9, 0.0  ;;  %v55_v8 = vld [vmem:[%s3489_s2 + $0xf8] sm:$0xff]  ;;  %v50_v9 = vld [vmem:[%s3489_s2 + $0xd0] sm:$0xff] }
  0x94   :  { %103 = vadd.xlane.f32.xlu1 %v102_v11  ;;  %v49_v11 = vld [vmem:[%s3489_s2 + $0xc8] sm:$0xff] }
  0x95   :  { %v101_v12 = vmul.f32 %v3049_v10, %v3049_v10  ;;  %v129_v50 = vmul.f32 %v127_v44, %v3049_v10  ;;  %v54_v10 = vld [vmem:[%s3489_s2 + $0xf0] sm:$0xff] }
  0x97   :  { %v105_v13 = vsel %vm88_vm0, %v101_v12, 0.0  ;;  %v53_v12 = vld [vmem:[%s3489_s2 + $0xe8] sm:$0xff] }
  0x98   :  { %106 = vadd.xlane.f32.xlu1 %v105_v13  ;;  %v48_v13 = vld [vmem:[%s3489_s2 + $0xc0] sm:$0xff] }
 0x11d   :  { %v104_v24 = vpop.xlane.xlu1 %103 }
 0x11e   :  { %v108_v25 = vmul.f32 0.032258064, %v104_v24  ;;  %v71_v24 = vld [vmem:[%s3489_s2 + $0x178] sm:$0xff] }
 0x120   :  { %2926 = vrsqrt.f32 %v108_v25  ;;  %vm112_vm1 = vcmp.eq.f32.partialorder %v108_v25, inf  ;;  %v115_v30 = vand.u32 2147483648, %v108_v25  ;;  %vm114_vm2 = vcmp.eq.f32.partialorder %v108_v25, 0.0 }
 0x121   :  { %v107_v26 = vpop.xlane.xlu1 %106 }
 0x122   :  { %v109_v27 = vmul.f32 0.032258064, %v107_v26  ;;  %v70_v26 = vld [vmem:[%s3489_s2 + $0x170] sm:$0xff] }
 0x124   :  { %2928 = vrsqrt.f32 %v109_v27  ;;  %vm119_vm3 = vcmp.eq.f32.partialorder %v109_v27, inf  ;;  %v122_v37 = vand.u32 2147483648, %v109_v27  ;;  %vm121_vm4 = vcmp.eq.f32.partialorder %v109_v27, 0.0 }
 0x12d   :  { %v2927_v28 = vpop.eup %2926 }
 0x12e   :  { %v111_v29 = vmul.f32 %v2927_v28, %v108_v25  ;;  %v69_v28 = vld [vmem:[%s3489_s2 + $0x168] sm:$0xff] }
 0x130   :  { %v113_v32 = vsel %vm112_vm1, %v108_v25, %v111_v29  ;;  %v66_v25 = vld [vmem:[%s3489_s2 + $0x150] sm:$0xff]  ;;  %v64_v29 = vld [vmem:[%s3489_s2 + $0x140] sm:$0xff] }
 0x131   :  { %v2929_v33 = vpop.eup %2928  ;;  %v116_v34 = vsel %vm114_vm2, %v115_v30, %v113_v32  ;;  %v68_v30 = vld [vmem:[%s3489_s2 + $0x160] sm:$0xff] }
 0x132   :  { %v130_v35 = vadd.f32 1e-06, %v116_v34  ;;  %v118_v36 = vmul.f32 %v2929_v33, %v109_v27 }
 0x134   :  { %2930 = vrcp.f32 %v130_v35  ;;  %v120_v39 = vsel %vm119_vm3, %v109_v27, %v118_v36  ;;  %v65_v27 = vld [vmem:[%s3489_s2 + $0x148] sm:$0xff] }
 0x135   :  { %v123_v40 = vsel %vm121_vm4, %v122_v37, %v120_v39 }
 0x136   :  { %v131_v41 = vadd.f32 1e-06, %v123_v40 }
 0x138   :  { %2932 = vrcp.f32 %v131_v41 }
 0x141   :  { %v2931_v48 = vpop.eup %2930 }
 0x142   :  { %v133_v49 = vmul.f32 %v2931_v48, %v128_v47 }
 0x144   :  { %v3098_v51 = vadd.f32 %v139_v46, %v133_v49 }
 0x145   :  { %v2933_v52 = vpop.eup %2932 }
 0x146   :  { %v135_v53 = vmul.f32 %v2933_v52, %v129_v50  ;;  %2677 = vmatprep.mubr.msk.f32.mxu0 %vm88_vm0, %v3098_v51  ;;  %2688 = vmatprep.mubr.msk.f32.mxu1 %vm88_vm0, %v3098_v51 }
 0x148   :  { %v3104_v54 = vadd.f32 %v139_v46, %v135_v53 }
 0x14a   :  { %2678 = vmatmul.mubr.msk.f32.vlgmr.msra.gmra.mxu0 %vm88_vm0, %v3104_v54  ;;  %2689 = vmatmul.mubr.msk.f32.vlgmr.msra.gmra.mxu1 %vm88_vm0, %v3104_v54 }
 0x14b   :  { %2692 = vmatpush3.msra.mxu0 %v35_v22  ;;  %2703 = vmatpush3.msra.mxu1 %v39_v23  ;;  %v60_v22 = vld [vmem:[%s3489_s2 + $0x120] sm:$0xff]  ;;  %v67_v23 = vld [vmem:[%s3489_s2 + $0x158] sm:$0xff] }
 0x14c   :  { %2693 = vmatprep.subr.mxu0 %v34_v55  ;;  %2699 = vmatprep.mubr.msk.f32.mxu0 %vm88_vm0, %v3098_v51 }
 0x14d   :  { %2704 = vmatprep.subr.mxu1 %v38_v56  ;;  %2710 = vmatprep.mubr.msk.f32.mxu1 %vm88_vm0, %v3098_v51 }
 0x14e   :  { %2694 = vmatpush3.msra.mxu0 %v34_v55  ;;  %2705 = vmatpush3.msra.mxu1 %v38_v56 }
 0x14f   :  { %2695 = vmatprep.subr.mxu0 %v33_v57  ;;  %2706 = vmatprep.subr.mxu1 %v37_v58 }
 0x150   :  { %2696 = vmatpush3.msra.mxu0 %v33_v57  ;;  %2707 = vmatpush3.msra.mxu1 %v37_v58  ;;  %v1406_v58 = vld [vmem:[%s3488_s1 + $0x8] sm:$0xff] }
 0x151   :  { %2697 = vmatprep.subr.mxu0 %v32_v59  ;;  %2708 = vmatprep.subr.mxu1 %v36_v60 }
 0x152   :  { %2698 = vmatpush3.msra.mxu0 %v32_v59  ;;  %2709 = vmatpush3.msra.mxu1 %v36_v60 }
 0x153   :  { %2700 = vmatmul.mubr.msk.f32.vlgmr.msra.gmra.mxu0 %vm88_vm0, %v3104_v54  ;;  %2711 = vmatmul.mubr.msk.f32.vlgmr.msra.gmra.mxu1 %vm88_vm0, %v3104_v54 }
 0x154   :  { %2713 = vmatprep.subr.mxu0 %v43_v61  ;;  %2724 = vmatprep.subr.mxu1 %v47_v62 }
 0x155   :  { %2714 = vmatpush3.msra.mxu0 %v43_v61  ;;  %2721 = vmatprep.mubr.msk.f32.mxu0 %vm88_vm0, %v3098_v51 }
 0x156   :  { %2725 = vmatpush3.msra.mxu1 %v47_v62  ;;  %2732 = vmatprep.mubr.msk.f32.mxu1 %vm88_vm0, %v3098_v51 }
 0x157   :  { %2715 = vmatprep.subr.mxu0 %v42_v63  ;;  %2726 = vmatprep.subr.mxu1 %v46_v2 }
 0x158   :  { %2716 = vmatpush3.msra.mxu0 %v42_v63  ;;  %2727 = vmatpush3.msra.mxu1 %v46_v2  ;;  %v1405_v63 = vld [vmem:[%s3488_s1] sm:$0xff] }
 0x159   :  { %2717 = vmatprep.subr.mxu0 %v41_v3  ;;  %2728 = vmatprep.subr.mxu1 %v45_v4 }
 0x15a   :  { %2718 = vmatpush3.msra.mxu0 %v41_v3  ;;  %2729 = vmatpush3.msra.mxu1 %v45_v4 }
 0x15b   :  { %2719 = vmatprep.subr.mxu0 %v40_v5  ;;  %2730 = vmatprep.subr.mxu1 %v44_v6 }
 0x15c   :  { %2720 = vmatpush3.msra.mxu0 %v40_v5  ;;  %2731 = vmatpush3.msra.mxu1 %v44_v6 }
 0x15d   :  { %2722 = vmatmul.mubr.msk.f32.vlgmr.msra.gmra.mxu0 %vm88_vm0, %v3104_v54  ;;  %2733 = vmatmul.mubr.msk.f32.vlgmr.msra.gmra.mxu1 %vm88_vm0, %v3104_v54 }
 0x15e   :  { %2735 = vmatprep.subr.mxu0 %v51_v7  ;;  %2746 = vmatprep.subr.mxu1 %v55_v8 }
 0x15f   :  { %2736 = vmatpush3.msra.mxu0 %v51_v7  ;;  %2743 = vmatprep.mubr.msk.f32.mxu0 %vm88_vm0, %v3098_v51 }
 0x160   :  { %2747 = vmatpush3.msra.mxu1 %v55_v8  ;;  %2754 = vmatprep.mubr.msk.f32.mxu1 %vm88_vm0, %v3098_v51 }
 0x161   :  { %2737 = vmatprep.subr.mxu0 %v50_v9  ;;  %2748 = vmatprep.subr.mxu1 %v54_v10 }
 0x162   :  { %2738 = vmatpush3.msra.mxu0 %v50_v9  ;;  %2749 = vmatpush3.msra.mxu1 %v54_v10 }
 0x163   :  { %2739 = vmatprep.subr.mxu0 %v49_v11  ;;  %2750 = vmatprep.subr.mxu1 %v53_v12 }
 0x164   :  { %2740 = vmatpush3.msra.mxu0 %v49_v11  ;;  %2751 = vmatpush3.msra.mxu1 %v53_v12 }
 0x165   :  { %2741 = vmatprep.subr.mxu0 %v48_v13  ;;  %2752 = vmatprep.subr.mxu1 %v52_v14 }
 0x166   :  { %2742 = vmatpush3.msra.mxu0 %v48_v13  ;;  %2753 = vmatpush3.msra.mxu1 %v52_v14 }
 0x167   :  { %2744 = vmatmul.mubr.msk.f32.vlgmr.msra.gmra.mxu0 %vm88_vm0, %v3104_v54  ;;  %2755 = vmatmul.mubr.msk.f32.vlgmr.msra.gmra.mxu1 %vm88_vm0, %v3104_v54 }
 0x168   :  { %2757 = vmatprep.subr.mxu0 %v59_v15  ;;  %2768 = vmatprep.subr.mxu1 %v63_v16 }
 0x169   :  { %2758 = vmatpush3.msra.mxu0 %v59_v15  ;;  %2765 = vmatprep.mubr.msk.f32.mxu0 %vm88_vm0, %v3098_v51 }
 0x16a   :  { %2769 = vmatpush3.msra.mxu1 %v63_v16  ;;  %2776 = vmatprep.mubr.msk.f32.mxu1 %vm88_vm0, %v3098_v51 }
 0x16b   :  { %2759 = vmatprep.subr.mxu0 %v58_v17  ;;  %2770 = vmatprep.subr.mxu1 %v62_v18 }
 0x16c   :  { %2760 = vmatpush3.msra.mxu0 %v58_v17  ;;  %2771 = vmatpush3.msra.mxu1 %v62_v18 }
 0x16d   :  { %2761 = vmatprep.subr.mxu0 %v57_v19  ;;  %2772 = vmatprep.subr.mxu1 %v61_v20 }
 0x16e   :  { %2762 = vmatpush3.msra.mxu0 %v57_v19  ;;  %2773 = vmatpush3.msra.mxu1 %v61_v20 }
 0x16f   :  { %2763 = vmatprep.subr.mxu0 %v56_v21  ;;  %2774 = vmatprep.subr.mxu1 %v60_v22 }
 0x170   :  { %2764 = vmatpush3.msra.mxu0 %v56_v21  ;;  %2775 = vmatpush3.msra.mxu1 %v60_v22 }
 0x171   :  { %2766 = vmatmul.mubr.msk.f32.vlgmr.msra.gmra.mxu0 %vm88_vm0, %v3104_v54  ;;  %2777 = vmatmul.mubr.msk.f32.vlgmr.msra.gmra.mxu1 %vm88_vm0, %v3104_v54 }
 0x172   :  { %2779 = vmatprep.subr.mxu0 %v67_v23  ;;  %2790 = vmatprep.subr.mxu1 %v71_v24 }
 0x173   :  { %2780 = vmatpush3.msra.mxu0 %v67_v23  ;;  %2787 = vmatprep.mubr.msk.f32.mxu0 %vm88_vm0, %v3098_v51 }
 0x174   :  { %2791 = vmatpush3.msra.mxu1 %v71_v24  ;;  %2798 = vmatprep.mubr.msk.f32.mxu1 %vm88_vm0, %v3098_v51 }
 0x175   :  { %2781 = vmatprep.subr.mxu0 %v66_v25  ;;  %2792 = vmatprep.subr.mxu1 %v70_v26 }
 0x176   :  { %2782 = vmatpush3.msra.mxu0 %v66_v25  ;;  %2793 = vmatpush3.msra.mxu1 %v70_v26 }
 0x177   :  { %2783 = vmatprep.subr.mxu0 %v65_v27  ;;  %2794 = vmatprep.subr.mxu1 %v69_v28 }
 0x178   :  { %2784 = vmatpush3.msra.mxu0 %v65_v27  ;;  %2795 = vmatpush3.msra.mxu1 %v69_v28 }
 0x179   :  { %2785 = vmatprep.subr.mxu0 %v64_v29  ;;  %2796 = vmatprep.subr.mxu1 %v68_v30 }
 0x17a   :  { %2786 = vmatpush3.msra.mxu0 %v64_v29  ;;  %2797 = vmatpush3.msra.mxu1 %v68_v30 }
 0x17b   :  { %2788 = vmatmul.mubr.msk.f32.vlgmr.msra.gmra.mxu0 %vm88_vm0, %v3104_v54  ;;  %2799 = vmatmul.mubr.msk.f32.vlgmr.msra.gmra.mxu1 %vm88_vm0, %v3104_v54 }
 0x20a   :  { %v2679_v31 = vpop.f32.mrf.mxu0  ;;  %v2690_v32 = vpop.f32.mrf.mxu1 }
 0x20c   :  { %v214_v33 = vpop.f32.mrf.mxu0  ;;  %v289_v34 = vpop.f32.mrf.mxu1 }
 0x20d   :  { %2805 = vmatprep.mubr.msk.f32.mxu0 %vm1048_vm5, %v214_v33  ;;  %2812 = vmatprep.mubr.msk.f32.mxu1 %vm1048_vm5, %v289_v34 }
 0x213   :  { %v2701_v35 = vpop.f32.mrf.mxu0  ;;  %v2712_v36 = vpop.f32.mrf.mxu1 }
 0x215   :  { %v364_v37 = vpop.f32.mrf.mxu0  ;;  %v439_v39 = vpop.f32.mrf.mxu1 }
 0x21d   :  { %v2723_v40 = vpop.f32.mrf.mxu0  ;;  %v2734_v41 = vpop.f32.mrf.mxu1 }
 0x21e   :  { %2801 = vmatprep.subr.msk.mxu0 %vm1048_vm5, %v2723_v40  ;;  %2808 = vmatprep.subr.msk.mxu1 %vm1048_vm5, %v2734_v41 }
 0x21f   :  { %v514_v42 = vpop.f32.mrf.mxu0  ;;  %v589_v44 = vpop.f32.mrf.mxu1  ;;  %2802 = vmatpush3.xpose.msk.msra.mxu0 %vm1048_vm5, %v2723_v40  ;;  %2809 = vmatpush3.xpose.msk.msra.mxu1 %vm1048_vm5, %v2734_v41 }
 0x220   :  { %2803 = vmatprep.subr.msk.mxu0 %vm1048_vm5, %v514_v42  ;;  %2810 = vmatprep.subr.msk.mxu1 %vm1048_vm5, %v589_v44 }
 0x223   :  { %2804 = vmatpush3.xpose.msk.msra.mxu0 %vm1048_vm5, %v514_v42  ;;  %2811 = vmatpush3.xpose.msk.msra.mxu1 %vm1048_vm5, %v589_v44 }
 0x226   :  { %2806 = vmatmul.mubr.msk.f32.vlgmr.msra.gmra.mxu0 %vm1048_vm5, %v2679_v31  ;;  %2813 = vmatmul.mubr.msk.f32.vlgmr.msra.gmra.mxu1 %vm1048_vm5, %v2690_v32 }
 0x227   :  { %v2745_v45 = vpop.f32.mrf.mxu0  ;;  %v2756_v46 = vpop.f32.mrf.mxu1  ;;  %2819 = vmatprep.mubr.msk.f32.mxu0 %vm1048_vm5, %v364_v37  ;;  %2826 = vmatprep.mubr.msk.f32.mxu1 %vm1048_vm5, %v439_v39 }
 0x228   :  { %2815 = vmatprep.subr.msk.mxu0 %vm1048_vm5, %v2745_v45  ;;  %2822 = vmatprep.subr.msk.mxu1 %vm1048_vm5, %v2756_v46 }
 0x229   :  { %v664_v47 = vpop.f32.mrf.mxu0  ;;  %v739_v48 = vpop.f32.mrf.mxu1  ;;  %2816 = vmatpush3.xpose.msk.msra.mxu0 %vm1048_vm5, %v2745_v45  ;;  %2823 = vmatpush3.xpose.msk.msra.mxu1 %vm1048_vm5, %v2756_v46 }
 0x22a   :  { %2817 = vmatprep.subr.msk.mxu0 %vm1048_vm5, %v664_v47  ;;  %2824 = vmatprep.subr.msk.mxu1 %vm1048_vm5, %v739_v48 }
 0x22d   :  { %2818 = vmatpush3.xpose.msk.msra.mxu0 %vm1048_vm5, %v664_v47  ;;  %2825 = vmatpush3.xpose.msk.msra.mxu1 %vm1048_vm5, %v739_v48  ;;  %v79_v47 = vld [vmem:[%s3489_s2 + $0x1b8] sm:$0xff] }
 0x230   :  { %2820 = vmatmul.mubr.msk.f32.vlgmr.msra.gmra.mxu0 %vm1048_vm5, %v2701_v35  ;;  %2827 = vmatmul.mubr.msk.f32.vlgmr.msra.gmra.mxu1 %vm1048_vm5, %v2712_v36 }
 0x231   :  { %v2767_v49 = vpop.f32.mrf.mxu0  ;;  %v3288_v51 = vpop.f32.mrf.mxu1 }
 0x232   :  { %2829 = vmatprep.subr.mxu0 %v2767_v49 }
 0x233   :  { %v814_v50 = vpop.f32.mrf.mxu0  ;;  %2830 = vmatpush3.msra.mxu0 %v2767_v49  ;;  %v3291_v52 = vpop.f32.mrf.mxu1 }
 0x234   :  { %2831 = vmatprep.subr.mxu0 %v814_v50 }
 0x235   :  { %2832 = vmatpush3.msra.mxu0 %v814_v50 }
 0x236   :  { %2836 = vmatprep.subr.mxu0 %v3288_v51 }
 0x23b   :  { %v2800_v53 = vpop.f32.mrf.mxu1  ;;  %v3293_v55 = vpop.f32.mrf.mxu0 }
 0x23c   :  { %2850 = vmatprep.subr.mxu1 %v2800_v53 }
 0x23d   :  { %v1039_v54 = vpop.f32.mrf.mxu1  ;;  %2851 = vmatpush3.msra.mxu1 %v2800_v53  ;;  %v3295_v56 = vpop.f32.mrf.mxu0 }
 0x23e   :  { %2852 = vmatprep.subr.mxu1 %v1039_v54 }
 0x23f   :  { %2853 = vmatpush3.msra.mxu1 %v1039_v54 }
 0x240   :  { %2868 = vmatprep.subr.msk.mxu1 %vm1048_vm5, %v79_v47 }
 0x2e6   :  { %v2807_v57 = vpop.f32.mrf.mxu0  ;;  %v2814_v59 = vpop.f32.mrf.mxu1 }
 0x2e7   :  { %v1398_v60 = vmul.f32 0.35355338, %v2807_v57  ;;  %v1400_v61 = vmul.f32 0.35355338, %v2814_v59 }
 0x2e8   :  { %v1127_v62 = vpop.f32.mrf.mxu0  ;;  %v1214_v2 = vpop.f32.mrf.mxu1 }
 0x2e9   :  { %v1408_v3 = vadd.f32 %v1406_v58, %v1398_v60  ;;  %v1410_v4 = vadd.f32 %v1406_v58, %v1400_v61  ;;  %v1397_v5 = vmul.f32 0.35355338, %v1127_v62  ;;  %v1399_v6 = vmul.f32 0.35355338, %v1214_v2 }
 0x2eb   :  { %v1417_v7 = vmul.f32 1.442695, %v1408_v3  ;;  %v1421_v8 = vmul.f32 1.442695, %v1410_v4  ;;  %v1407_v9 = vadd.f32 %v1405_v63, %v1397_v5  ;;  %v1409_v10 = vadd.f32 %v1405_v63, %v1399_v6 }
 0x2ed   :  { %2934 = vpow2.f32 %v1417_v7  ;;  %v1415_v11 = vmul.f32 1.442695, %v1407_v9  ;;  %v1419_v12 = vmul.f32 1.442695, %v1409_v10  ;;  %v75_v7 = vld [vmem:[%s3489_s2 + $0x198] sm:$0xff] }
 0x2ee   :  { %2936 = vpow2.f32 %v1421_v8 }
 0x2ef   :  { %2938 = vpow2.f32 %v1415_v11 }
 0x2f0   :  { %v2821_v13 = vpop.f32.mrf.mxu0  ;;  %v2828_v14 = vpop.f32.mrf.mxu1  ;;  %2940 = vpow2.f32 %v1419_v12 }
 0x2f1   :  { %v1402_v15 = vmul.f32 0.35355338, %v2821_v13  ;;  %v1404_v16 = vmul.f32 0.35355338, %v2828_v14  ;;  %v78_v13 = vld [vmem:[%s3489_s2 + $0x1b0] sm:$0xff]  ;;  %v72_v14 = vld [vmem:[%s3489_s2 + $0x180] sm:$0xff] }
 0x2f2   :  { %v1301_v17 = vpop.f32.mrf.mxu0  ;;  %v1388_v18 = vpop.f32.mrf.mxu1 }
 0x2f3   :  { %v1412_v19 = vadd.f32 %v1406_v58, %v1402_v15  ;;  %v1414_v20 = vadd.f32 %v1406_v58, %v1404_v16  ;;  %v1401_v21 = vmul.f32 0.35355338, %v1301_v17  ;;  %v1403_v22 = vmul.f32 0.35355338, %v1388_v18  ;;  %v77_v15 = vld [vmem:[%s3489_s2 + $0x1a8] sm:$0xff]  ;;  %v76_v16 = vld [vmem:[%s3489_s2 + $0x1a0] sm:$0xff] }
 0x2f4   :  { %v83_v17 = vld [vmem:[%s3489_s2 + $0x1d8] sm:$0xff] }
 0x2f5   :  { %v1425_v23 = vmul.f32 1.442695, %v1412_v19  ;;  %v1429_v24 = vmul.f32 1.442695, %v1414_v20  ;;  %v1411_v25 = vadd.f32 %v1405_v63, %v1401_v21  ;;  %v1413_v26 = vadd.f32 %v1405_v63, %v1403_v22  ;;  %v87_v18 = vld [vmem:[%s3489_s2 + $0x1f8] sm:$0xff]  ;;  %v82_v21 = vld [vmem:[%s3489_s2 + $0x1d0] sm:$0xff] }
 0x2f7   :  { %2942 = vpow2.f32 %v1425_v23  ;;  %v1423_v27 = vmul.f32 1.442695, %v1411_v25  ;;  %v1427_v28 = vmul.f32 1.442695, %v1413_v26  ;;  %v86_v25 = vld [vmem:[%s3489_s2 + $0x1f0] sm:$0xff] }
 0x2f8   :  { %2944 = vpow2.f32 %v1429_v24  ;;  %v81_v24 = vld [vmem:[%s3489_s2 + $0x1c8] sm:$0xff] }
 0x2f9   :  { %2946 = vpow2.f32 %v1423_v27  ;;  %v80_v27 = vld [vmem:[%s3489_s2 + $0x1c0] sm:$0xff] }
 0x2fa   :  { %v2935_v29 = vpop.eup %2934  ;;  %2948 = vpow2.f32 %v1427_v28 }
 0x2fb   :  { %v2937_v30 = vpop.eup %2936  ;;  %v1435_v31 = vsel %vm1431_vm6, %v2935_v29, 0.0 }
 0x2fc   :  { %v2939_v32 = vpop.eup %2938  ;;  %1436 = vadd.xlane.f32.xlu1 %v1435_v31  ;;  %v1441_v35 = vsel %vm1431_vm6, %v2937_v30, 0.0 }
 0x2fd   :  { %v1432_v33 = vsel %vm1431_vm6, %v2939_v32, 0.0  ;;  %v2941_v34 = vpop.eup %2940 }
 0x2fe   :  { %1433 = vadd.xlane.f32.xlu0 %v1432_v33  ;;  %v1438_v36 = vsel %vm1431_vm6, %v2941_v34, 0.0 }
 0x300   :  { %1442 = vadd.xlane.f32.xlu1 %v1441_v35 }
 0x302   :  { %1439 = vadd.xlane.f32.xlu0 %v1438_v36 }
 0x304   :  { %v2943_v37 = vpop.eup %2942 }
 0x305   :  { %v2945_v39 = vpop.eup %2944  ;;  %v1447_v40 = vsel %vm1431_vm6, %v2943_v37, 0.0 }
 0x306   :  { %v2947_v41 = vpop.eup %2946  ;;  %1448 = vadd.xlane.f32.xlu1 %v1447_v40  ;;  %v1453_v45 = vsel %vm1431_vm6, %v2945_v39, 0.0 }
 0x307   :  { %v1444_v42 = vsel %vm1431_vm6, %v2947_v41, 0.0  ;;  %v2949_v44 = vpop.eup %2948 }
 0x308   :  { %1445 = vadd.xlane.f32.xlu0 %v1444_v42  ;;  %v1450_v46 = vsel %vm1431_vm6, %v2949_v44, 0.0 }
 0x30a   :  { %1454 = vadd.xlane.f32.xlu1 %v1453_v45 }
 0x30c   :  { %1451 = vadd.xlane.f32.xlu0 %v1450_v46 }
 0x385   :  { %v1437_v48 = vpop.xlane.xlu1 %1436 }
 0x386   :  { %2950 = vrcp.f32 %v1437_v48 }
 0x387   :  { %v1434_v49 = vpop.xlane.xlu0 %1433 }
 0x388   :  { %2952 = vrcp.f32 %v1434_v49 }
 0x389   :  { %v1443_v50 = vpop.xlane.xlu1 %1442 }
 0x38a   :  { %2954 = vrcp.f32 %v1443_v50 }
 0x38b   :  { %v1440_v53 = vpop.xlane.xlu0 %1439 }
 0x38c   :  { %2956 = vrcp.f32 %v1440_v53 }
 0x38f   :  { %v1449_v54 = vpop.xlane.xlu1 %1448 }
 0x390   :  { %2958 = vrcp.f32 %v1449_v54 }
 0x391   :  { %v1446_v57 = vpop.xlane.xlu0 %1445 }
 0x392   :  { %2960 = vrcp.f32 %v1446_v57 }
 0x393   :  { %v1455_v58 = vpop.xlane.xlu1 %1454  ;;  %v2951_v59 = vpop.eup %2950 }
 0x394   :  { %2962 = vrcp.f32 %v1455_v58  ;;  %v1465_v63 = vmul.f32 %v2951_v59, %v2935_v29  ;;  %v85_v29 = vld [vmem:[%s3489_s2 + $0x1e8] sm:$0xff] }
 0x395   :  { %v2953_v60 = vpop.eup %2952  ;;  %v1452_v61 = vpop.xlane.xlu0 %1451 }
 0x396   :  { %2964 = vrcp.f32 %v1452_v61  ;;  %v1464_v62 = vmul.f32 %v2953_v60, %v2939_v32  ;;  %v84_v32 = vld [vmem:[%s3489_s2 + $0x1e0] sm:$0xff] }
 0x397   :  { %v2955_v2 = vpop.eup %2954 }
 0x398   :  { %2833 = vmatprep.mubr.msk.f32.mxu0 %vm1431_vm6, %v1464_v62  ;;  %v1467_v5 = vmul.f32 %v2955_v2, %v2937_v30 }
 0x399   :  { %v2957_v3 = vpop.eup %2956  ;;  %2834 = vmatmul.mubr.msk.f32.vlgmr.msra.gmra.mxu0 %vm1431_vm6, %v1465_v63 }
 0x39a   :  { %2837 = vmatpush3.msra.mxu0 %v3288_v51  ;;  %v1466_v4 = vmul.f32 %v2957_v3, %v2941_v34 }
 0x39b   :  { %2838 = vmatprep.subr.mxu0 %v3291_v52 }
 0x39c   :  { %2839 = vmatpush3.msra.mxu0 %v3291_v52  ;;  %2840 = vmatprep.mubr.msk.f32.mxu0 %vm1431_vm6, %v1466_v4 }
 0x39d   :  { %2843 = vmatprep.subr.mxu0 %v3293_v55  ;;  %2841 = vmatmul.mubr.msk.f32.vlgmr.msra.gmra.mxu0 %vm1431_vm6, %v1467_v5  ;;  %v2959_v6 = vpop.eup %2958 }
 0x39e   :  { %2844 = vmatpush3.msra.mxu0 %v3293_v55  ;;  %v1469_v52 = vmul.f32 %v2959_v6, %v2943_v37  ;;  %v74_v55 = vld [vmem:[%s3489_s2 + $0x190] sm:$0xff] }
 0x39f   :  { %v2961_v51 = vpop.eup %2960  ;;  %2845 = vmatprep.subr.mxu0 %v3295_v56 }
 0x3a0   :  { %2846 = vmatpush3.msra.mxu0 %v3295_v56  ;;  %v1468_v8 = vmul.f32 %v2961_v51, %v2947_v41  ;;  %v73_v56 = vld [vmem:[%s3489_s2 + $0x188] sm:$0xff] }
 0x3a1   :  { %2857 = vmatprep.subr.msk.mxu0 %vm1048_vm5, %v75_v7  ;;  %v2963_v9 = vpop.eup %2962 }
 0x3a2   :  { %2847 = vmatprep.mubr.msk.f32.mxu0 %vm1431_vm6, %v1468_v8  ;;  %v1471_v12 = vmul.f32 %v2963_v9, %v2945_v39  ;;  %v2239_v9 = vld [vmem:[%s3490_s3 + $0x18] sm:$0xff] }
 0x3a3   :  { %v2965_v10 = vpop.eup %2964  ;;  %2848 = vmatmul.mubr.msk.f32.vlgmr.msra.gmra.mxu0 %vm1431_vm6, %v1469_v52 }
 0x3a4   :  { %v1470_v11 = vmul.f32 %v2965_v10, %v2949_v44  ;;  %2858 = vmatpush3.xpose.msk.msra.mxu0 %vm1048_vm5, %v75_v7  ;;  %v2237_v10 = vld [vmem:[%s3490_s3 + $0x8] sm:$0xff] }
 0x3a5   :  { %2859 = vmatprep.subr.msk.mxu0 %vm1048_vm5, %v74_v55 }
 0x3a6   :  { %2854 = vmatprep.mubr.msk.f32.mxu1 %vm1431_vm6, %v1470_v11  ;;  %v2236_v11 = vld [vmem:[%s3490_s3] sm:$0xff] }
 0x3a7   :  { %2855 = vmatmul.mubr.msk.f32.vlgmr.msra.gmra.mxu1 %vm1431_vm6, %v1471_v12  ;;  %v2243_v12 = vld [vmem:[%s3490_s3 + $0x38] sm:$0xff] }
 0x3a8   :  { %2860 = vmatpush3.xpose.msk.msra.mxu0 %vm1048_vm5, %v74_v55  ;;  %2869 = vmatpush3.xpose.msk.msra.mxu1 %vm1048_vm5, %v79_v47  ;;  %v2238_v55 = vld [vmem:[%s3490_s3 + $0x10] sm:$0xff] }
 0x3a9   :  { %2861 = vmatprep.subr.msk.mxu0 %vm1048_vm5, %v73_v56  ;;  %2870 = vmatprep.subr.msk.mxu1 %vm1048_vm5, %v78_v13 }
 0x3ac   :  { %2862 = vmatpush3.xpose.msk.msra.mxu0 %vm1048_vm5, %v73_v56  ;;  %2871 = vmatpush3.xpose.msk.msra.mxu1 %vm1048_vm5, %v78_v13  ;;  %v2242_v56 = vld [vmem:[%s3490_s3 + $0x30] sm:$0xff] }
 0x3ad   :  { %2863 = vmatprep.subr.msk.mxu0 %vm1048_vm5, %v72_v14  ;;  %2872 = vmatprep.subr.msk.mxu1 %vm1048_vm5, %v77_v15 }
 0x3b0   :  { %2864 = vmatpush3.xpose.msk.msra.mxu0 %vm1048_vm5, %v72_v14  ;;  %2873 = vmatpush3.xpose.msk.msra.mxu1 %vm1048_vm5, %v77_v15 }
 0x3b1   :  { %2874 = vmatprep.subr.msk.mxu1 %vm1048_vm5, %v76_v16  ;;  %2879 = vmatprep.subr.msk.mxu0 %vm1048_vm5, %v83_v17 }
 0x3b4   :  { %2875 = vmatpush3.xpose.msk.msra.mxu1 %vm1048_vm5, %v76_v16 }
 0x3b5   :  { %2890 = vmatprep.subr.msk.mxu1 %vm1048_vm5, %v87_v18 }
 0x459   :  { %v2835_v19 = vpop.f32.mrf.mxu0 }
 0x45b   :  { %v1544_v20 = vpop.f32.mrf.mxu0 }
 0x45c   :  { %2865 = vmatprep.mubr.msk.f32.mxu0 %vm1048_vm5, %v1544_v20 }
 0x45d   :  { %v2842_v22 = vpop.f32.mrf.mxu0  ;;  %2866 = vmatmul.mubr.msk.f32.vlgmr.msra.gmra.mxu0 %vm1048_vm5, %v2835_v19 }
 0x45e   :  { %2880 = vmatpush3.xpose.msk.msra.mxu0 %vm1048_vm5, %v83_v17 }
 0x45f   :  { %v1625_v23 = vpop.f32.mrf.mxu0  ;;  %2881 = vmatprep.subr.msk.mxu0 %vm1048_vm5, %v82_v21 }
 0x460   :  { %2876 = vmatprep.mubr.msk.f32.mxu1 %vm1048_vm5, %v1625_v23 }
 0x461   :  { %2877 = vmatmul.mubr.msk.f32.vlgmr.msra.gmra.mxu1 %vm1048_vm5, %v2842_v22 }
 0x462   :  { %2882 = vmatpush3.xpose.msk.msra.mxu0 %vm1048_vm5, %v82_v21  ;;  %2891 = vmatpush3.xpose.msk.msra.mxu1 %vm1048_vm5, %v87_v18 }
 0x463   :  { %v2849_v26 = vpop.f32.mrf.mxu0  ;;  %2883 = vmatprep.subr.msk.mxu0 %vm1048_vm5, %v81_v24  ;;  %2892 = vmatprep.subr.msk.mxu1 %vm1048_vm5, %v86_v25 }
 0x465   :  { %v1706_v28 = vpop.f32.mrf.mxu0 }
 0x466   :  { %2887 = vmatprep.mubr.msk.f32.mxu0 %vm1048_vm5, %v1706_v28  ;;  %2884 = vmatpush3.xpose.msk.msra.mxu0 %vm1048_vm5, %v81_v24 }
 0x467   :  { %v2856_v30 = vpop.f32.mrf.mxu1  ;;  %2893 = vmatpush3.xpose.msk.msra.mxu1 %vm1048_vm5, %v86_v25  ;;  %2885 = vmatprep.subr.msk.mxu0 %vm1048_vm5, %v80_v27 }
 0x468   :  { %2894 = vmatprep.subr.msk.mxu1 %vm1048_vm5, %v85_v29 }
 0x469   :  { %v1787_v31 = vpop.f32.mrf.mxu1 }
 0x46a   :  { %2898 = vmatprep.mubr.msk.f32.mxu1 %vm1048_vm5, %v1787_v31  ;;  %2886 = vmatpush3.xpose.msk.msra.mxu0 %vm1048_vm5, %v80_v27  ;;  %v2232_v31 = vsub.s32 3, %v3085_v38 }
 0x46b   :  { %2895 = vmatpush3.xpose.msk.msra.mxu1 %vm1048_vm5, %v85_v29  ;;  %2901 = vmatprep.subr.mxu0 %v2239_v9  ;;  %v2220_v29 = vsub.s32 2, %v3085_v38 }
 0x46c   :  { %2896 = vmatprep.subr.msk.mxu1 %vm1048_vm5, %v84_v32 }
 0x46d   :  { %2888 = vmatmul.mubr.msk.f32.vlgmr.msra.gmra.mxu0 %vm1048_vm5, %v2849_v26 }
 0x46e   :  { %2902 = vmatpush3.msra.mxu0 %v2239_v9 }
 0x46f   :  { %2897 = vmatpush3.xpose.msk.msra.mxu1 %vm1048_vm5, %v84_v32  ;;  %2903 = vmatprep.subr.mxu0 %v2238_v55 }
 0x470   :  { %2904 = vmatpush3.msra.mxu0 %v2238_v55  ;;  %2912 = vmatprep.subr.msk.mxu1 %vm2335_vm7, %v2243_v12 }
 0x471   :  { %2905 = vmatprep.subr.mxu0 %v2237_v10 }
 0x472   :  { %2899 = vmatmul.mubr.msk.f32.vlgmr.msra.gmra.mxu1 %vm1048_vm5, %v2856_v30  ;;  %2906 = vmatpush3.msra.mxu0 %v2237_v10  ;;  %v2221_v30 = vrot.slane %v3091_v43, %v2220_v29 }
 0x473   :  { %2907 = vmatprep.subr.mxu0 %v2236_v11  ;;  %2913 = vmatpush3.xpose.msk.msra.mxu1 %vm2335_vm7, %v2243_v12 }
 0x474   :  { %2908 = vmatpush3.msra.mxu0 %v2236_v11  ;;  %2914 = vmatprep.subr.msk.mxu1 %vm2335_vm7, %v2242_v56 }
 0x477   :  { %2915 = vmatpush3.xpose.msk.msra.mxu1 %vm2335_vm7, %v2242_v56 }
 0x51d   :  { %v2867_v33 = vpop.f32.mrf.mxu0 }
 0x51e   :  { %v2175_v40 = vsel %vm88_vm0, %v2867_v33, 0.0 }
 0x51f   :  { %v1880_v35 = vpop.f32.mrf.mxu0 }
 0x520   :  { %v2168_v46 = vsel %vm88_vm0, %v1880_v35, 0.0 }
 0x521   :  { %v2878_v34 = vpop.f32.mrf.mxu1 }
 0x522   :  { %v2176_v37 = vsel %vm88_vm0, %v2878_v34, 0.0 }
 0x523   :  { %v1973_v36 = vpop.f32.mrf.mxu1  ;;  %v2177_v45 = vadd.f32 %v2176_v37, %v2175_v40  ;;  %v2233_v37 = vrot.slane %v3091_v43, %v2232_v31 }
 0x524   :  { %v2169_v41 = vsel %vm88_vm0, %v1973_v36, 0.0 }
 0x525   :  { %v2170_v48 = vadd.f32 %v2169_v41, %v2168_v46 }
 0x52d   :  { %v2889_v39 = vpop.f32.mrf.mxu0 }
 0x52e   :  { %v2178_v42 = vsel %vm88_vm0, %v2889_v39, 0.0 }
 0x52f   :  { %v2066_v44 = vpop.f32.mrf.mxu0  ;;  %v2179_v49 = vadd.f32 %v2178_v42, %v2177_v45  ;;  %v2241_v42 = vld [vmem:[%s3490_s3 + $0x28] sm:$0xff]  ;;  %v2246_v45 = vsub.s32 5, %v3085_v38 }
 0x530   :  { %v2171_v47 = vsel %vm88_vm0, %v2066_v44, 0.0  ;;  %2916 = vmatprep.subr.msk.mxu1 %vm2335_vm7, %v2241_v42  ;;  %v2240_v44 = vld [vmem:[%s3490_s3 + $0x20] sm:$0xff]  ;;  %s2996_s3 = smov [#allocation2]  }
 0x531   :  { %v2172_v54 = vadd.f32 %v2171_v47, %v2170_v48  ;;  %2917 = vmatpush3.xpose.msk.msra.mxu1 %vm2335_vm7, %v2241_v42  ;;  %v2247_v46 = vrot.slane %v3091_v43, %v2246_v45  ;;  %s2438_s8 = sshll.u32 %s2996_s3, 4  ;;  %s2439_s8 = int_to_ptr.vmem [resolvable:$true] %s2438_s8 }
 0x532   :  { %v2900_v50 = vpop.f32.mrf.mxu1  ;;  %2918 = vmatprep.subr.msk.mxu1 %vm2335_vm7, %v2240_v44  ;;  %s2974_s9 = scalar_lea.vmem %s2439_s8, 256  ;;  %p2979_p1 = scmp.lt.s32.totalorder %s2439_s8, %s2439_s8 }
 0x533   :  { %v2180_v53 = vsel %vm88_vm0, %v2900_v50, 0.0  ;;  %p2975_p0 = scmp.ne.s32.totalorder %s2439_s8, %s2974_s9  ;;  %p2980_p2 = scmp.lt.s32.totalorder %s2974_s9, %s2974_s9 }
 0x534   :  { %v2181_v57 = vadd.f32 %v2180_v53, %v2179_v49  ;;  %v2159_v58 = vpop.f32.mrf.mxu1 }
 0x535   :  { %v2173_v59 = vsel %vm88_vm0, %v2159_v58, 0.0  ;;  %2919 = vmatpush3.xpose.msk.msra.mxu1 %vm2335_vm7, %v2240_v44  ;;  %p2981_p3 = por %p2980_p2, %p2979_p1 }
 0x536   :  { %v3423_v60 = vadd.f32 %v2181_v57, %v3037_v1  ;;  %v2174_v61 = vadd.f32 %v2173_v59, %v2172_v54  ;;  %v2333_v57 = vsub.s32 4, %v3085_v38 }
 0x537   :  { %p2982_p4 = pnand %p2981_p3, %p2975_p0 }
 0x538   :  { %v3426_v62 = vadd.f32 %v2174_v61, %v3032_v0  ;;  %v2187_v63 = vsel %vm88_vm0, %v3423_v60, 0.0  ;;  %v2334_v58 = vrot.slane %v3091_v43, %v2333_v57 }
 0x539   :  { %2188 = vadd.xlane.f32.xlu1 %v2187_v63 }
 0x53a   :  { %v2184_v2 = vsel %vm88_vm0, %v3426_v62, 0.0 }
 0x53b   :  { %2185 = vadd.xlane.f32.xlu0 %v2184_v2 }
 0x5c2   :  { %v2189_v3 = vpop.xlane.xlu1 %2188 }
 0x5c3   :  { %v2191_v4 = vmul.f32 0.03125, %v2189_v3 }
 0x5c4   :  { %v2186_v5 = vpop.xlane.xlu0 %2185 }
 0x5c5   :  { %v2193_v6 = vsub.f32 %v3423_v60, %v2191_v4  ;;  %v2190_v7 = vmul.f32 0.03125, %v2186_v5 }
 0x5c7   :  { %v2192_v1 = vsub.f32 %v3426_v62, %v2190_v7  ;;  %v2195_v51 = vmul.f32 %v2193_v6, %v2193_v6  ;;  %v2223_v33 = vmul.f32 %v2221_v30, %v2193_v6 }
 0x5c9   :  { %v2199_v0 = vsel %vm88_vm0, %v2195_v51, 0.0  ;;  %v2194_v8 = vmul.f32 %v2192_v1, %v2192_v1  ;;  %v2222_v34 = vmul.f32 %v2221_v30, %v2192_v1 }
 0x5ca   :  { %2200 = vadd.xlane.f32.xlu1 %v2199_v0 }
 0x5cb   :  { %v2196_v52 = vsel %vm88_vm0, %v2194_v8, 0.0 }
 0x5cc   :  { %2197 = vadd.xlane.f32.xlu0 %v2196_v52 }
 0x653   :  { %v2201_v13 = vpop.xlane.xlu1 %2200 }
 0x654   :  { %v2203_v14 = vmul.f32 0.032258064, %v2201_v13 }
 0x655   :  { %v2198_v15 = vpop.xlane.xlu0 %2197 }
 0x656   :  { %2966 = vrsqrt.f32 %v2203_v14  ;;  %v2202_v16 = vmul.f32 0.032258064, %v2198_v15  ;;  %vm2213_vm8 = vcmp.eq.f32.partialorder %v2203_v14, inf  ;;  %v2216_v19 = vand.u32 2147483648, %v2203_v14 }
 0x657   :  { %vm2215_vm9 = vcmp.eq.f32.partialorder %v2203_v14, 0.0 }
 0x658   :  { %2968 = vrsqrt.f32 %v2202_v16  ;;  %vm2206_vm10 = vcmp.eq.f32.partialorder %v2202_v16, inf  ;;  %v2209_v25 = vand.u32 2147483648, %v2202_v16  ;;  %vm2208_vm11 = vcmp.eq.f32.partialorder %v2202_v16, 0.0 }
 0x663   :  { %v2967_v17 = vpop.eup %2966 }
 0x664   :  { %v2212_v18 = vmul.f32 %v2967_v17, %v2203_v14 }
 0x665   :  { %v2969_v20 = vpop.eup %2968 }
 0x666   :  { %v2214_v21 = vsel %vm2213_vm8, %v2203_v14, %v2212_v18  ;;  %v2205_v23 = vmul.f32 %v2969_v20, %v2202_v16 }
 0x667   :  { %v2217_v22 = vsel %vm2215_vm9, %v2216_v19, %v2214_v21 }
 0x668   :  { %v2225_v24 = vadd.f32 1e-06, %v2217_v22  ;;  %v2207_v26 = vsel %vm2206_vm10, %v2202_v16, %v2205_v23 }
 0x669   :  { %v2210_v27 = vsel %vm2208_vm11, %v2209_v25, %v2207_v26 }
 0x66a   :  { %2970 = vrcp.f32 %v2225_v24  ;;  %v2224_v28 = vadd.f32 1e-06, %v2210_v27 }
 0x66c   :  { %2972 = vrcp.f32 %v2224_v28 }
 0x677   :  { %v2971_v32 = vpop.eup %2970 }
 0x678   :  { %v2229_v36 = vmul.f32 %v2971_v32, %v2223_v33 }
 0x679   :  { %v2973_v35 = vpop.eup %2972 }
 0x67a   :  { %v2227_v39 = vmul.f32 %v2973_v35, %v2222_v34  ;;  %v2235_v41 = vadd.f32 %v2233_v37, %v2229_v36 }
 0x67c   :  { %v2234_v40 = vadd.f32 %v2233_v37, %v2227_v39 }
 0x67e   :  { %2909 = vmatprep.mubr.msk.f32.mxu0 %vm88_vm0, %v2234_v40 }
 0x67f   :  { %2910 = vmatmul.mubr.msk.f32.vlgmr.msra.gmra.mxu0 %vm88_vm0, %v2235_v41 }
 0x73f   :  { %v2911_v47 = vpop.f32.mrf.mxu0 }
 0x740   :  { %v2326_v48 = vadd.f32 %v2911_v47, %v2247_v46 }
 0x741   :  { %v2320_v49 = vpop.f32.mrf.mxu0 }
 0x742   :  { %v2321_v50 = vadd.f32 %v2320_v49, %v2247_v46  ;;  %v2330_v54 = vmax.f32 %v2326_v48, 0.0 }
 0x744   :  { %v2329_v53 = vmax.f32 %v2321_v50, 0.0 }
 0x746   :  { %2920 = vmatprep.mubr.msk.f32.mxu1 %vm2335_vm7, %v2329_v53 }
 0x747   :  { %2921 = vmatmul.mubr.msk.f32.vlgmr.msra.gmra.mxu1 %vm2335_vm7, %v2330_v54 }
 0x807   :  { %v2922_v59 = vpop.f32.mrf.mxu1 }
 0x808   :  { %v2426_v61 = vadd.f32 %v2922_v59, %v2334_v58 }
 0x809   :  { %v2420_v63 = vpop.f32.mrf.mxu1 }
 0x80a   :  { %v2430_v2 = vadd.f32 %v2426_v61, %v3423_v60  ;;  %v2421_v3 = vadd.f32 %v2420_v63, %v2334_v58 }
 0x80c   :  { %2432 = vst.msk [vmem:[#allocation2 + $0x8] sm:$0xff] %vm88_vm0, %v2430_v2  ;;  %v2429_v4 = vadd.f32 %v2421_v3, %v3426_v62 }
 0x80e   :  { %2431 = vst.msk [vmem:[#allocation2] sm:$0xff] %vm88_vm0, %v2429_v4 }
 0x80f   :  { %2985 = shalt.err (!%p2982_p4)
}
 0x810   :  { %s2997_s10 = smov 128   ;;  %s2998_s11 = smov 8  }
 0x811   :  { %2444 = dma.vmem_to_hbm [thread:$0]  %s2439_s8, 256, %s3492_s5, [#allocation3], %s2997_s10, %s2997_s10, %s2998_s11  }
 0x812   :  { %2994 = dma.done.wait [#allocation3], 256  }
 0x813   :  { %2995 = vsyncadd [#allocation3], 4294967040 }
 0x814   :  { %2448 = vsyncpa [#allocation3], 1 }

</bundles_post_ra>
